<compile_context>
chip_gen: v5e
topology: v5e:2x2
jax: 0.10.0
libtpu: 0.0.40
codegen_flags: <defaults>
</compile_context>

<pallas_src>
import jax
import jax.numpy as jnp
from jax.experimental import pallas as pl
from jax.experimental.pallas import tpu as pltpu

PART = 6
BN_EPS = 1e-5
LEAKY_SLOPE = 0.1


def _pcb_head_kernel(pooled_ref, w1_ref, b1_ref, w2_ref, b2_ref, out_ref):
    # One grid step per part; the whole C reduction runs in a single MXU pass.
    # pooled_ref: (1, B, C)         bf16
    # w1_ref:     (1, C, NB)        bf16  (BN folded in)
    # b1_ref:     (1, 1, NB)        f32   (BN folded in)
    # w2_ref:     (1, NB, NCLS_PAD) bf16
    # b2_ref:     (1, 1, NCLS_PAD)  f32
    # out_ref:    (1, B, NCLS_PAD)  f32
    h = jnp.dot(pooled_ref[0], w1_ref[0], preferred_element_type=jnp.float32)
    h = h + b1_ref[0]
    # LeakyReLU(0.1); Dropout is eval-mode identity.
    h = jnp.where(h > 0, h, LEAKY_SLOPE * h)
    logits = jnp.dot(h.astype(w2_ref.dtype), w2_ref[0],
                     preferred_element_type=jnp.float32)
    out_ref[0] = (logits + b2_ref[0]).astype(out_ref.dtype)


def prepare_params(params):
    """One-time weight preparation (call at weight-load time, NOT per forward).

    Folds BatchNorm1d (eval mode, running stats) into Linear1, casts weights to
    bf16, and pads the class dimension up to a multiple of 128 so the logits
    writeback is a lane-dense unmasked store.
    """
    w1, b1, gamma, beta, rmean, rvar, w2, b2 = params
    scale = gamma * jax.lax.rsqrt(rvar + BN_EPS)                    # (PART, nb)
    w1_f = (w1 * scale[:, None, :]).astype(jnp.bfloat16)            # (PART, C, nb)
    b1_f = ((b1 - rmean) * scale + beta)[:, None, :]                # (PART, 1, nb) f32

    ncls = w2.shape[-1]
    ncls_pad = ((ncls + 127) // 128) * 128
    w2_p = jnp.pad(w2, ((0, 0), (0, 0), (0, ncls_pad - ncls))).astype(jnp.bfloat16)
    b2_p = jnp.pad(b2, ((0, 0), (0, ncls_pad - ncls)))[:, None, :]  # (PART,1,ncls_pad) f32

    return {"w1_f": w1_f, "b1_f": b1_f, "w2_p": w2_p, "b2_p": b2_p, "ncls": ncls}


def pcb_forward(x_nchw, prep):
    """x_nchw: backbone feature map (B, C, H, W). Returns list of PART logits."""
    w1_f, b1_f, w2_p, b2_p = prep["w1_f"], prep["b1_f"], prep["w2_p"], prep["b2_p"]
    ncls = prep["ncls"]
    B, C, H, W = x_nchw.shape
    assert H % PART == 0, "H must be divisible by the number of parts"
    hs = H // PART
    nb = w1_f.shape[-1]
    ncls_pad = w2_p.shape[-1]

    # --- AdaptiveAvgPool2d((PART, 1)) as a plain XLA reduction on NCHW ------
    # Explicit f32 accumulation dtype so no full f32 copy of the feature map
    # is materialized when the backbone output is bf16.
    pooled = jnp.mean(x_nchw.reshape(B, C, PART, hs, W), axis=(3, 4),
                      dtype=jnp.float32)                            # (B, C, PART)
    # Only the tiny pooled tensor changes layout: (PART, B, C), bf16 for the MXU.
    pooled = jnp.transpose(pooled, (2, 0, 1)).astype(jnp.bfloat16)

    bytes_accessed = (2 * PART * B * C            # pooled (bf16)
                      + 2 * PART * C * nb         # w1 (bf16)
                      + 4 * PART * nb             # b1 (f32)
                      + 2 * PART * nb * ncls_pad  # w2 (bf16)
                      + 4 * PART * ncls_pad       # b2 (f32)
                      + 4 * PART * B * ncls_pad)  # output (f32)

    out = pl.pallas_call(
        _pcb_head_kernel,
        out_shape=jax.ShapeDtypeStruct((PART, B, ncls_pad), jnp.float32),
        grid_spec=pltpu.PrefetchScalarGridSpec(
            num_scalar_prefetch=0,
            grid=(PART,),
            in_specs=[
                pl.BlockSpec((1, B, C),         lambda i: (i, 0, 0)),  # pooled
                pl.BlockSpec((1, C, nb),        lambda i: (i, 0, 0)),  # w1 (folded)
                pl.BlockSpec((1, 1, nb),        lambda i: (i, 0, 0)),  # b1 (folded)
                pl.BlockSpec((1, nb, ncls_pad), lambda i: (i, 0, 0)),  # w2
                pl.BlockSpec((1, 1, ncls_pad),  lambda i: (i, 0, 0)),  # b2
            ],
            out_specs=pl.BlockSpec((1, B, ncls_pad), lambda i: (i, 0, 0)),
        ),
        compiler_params=pltpu.CompilerParams(
            dimension_semantics=("parallel",),
            vmem_limit_bytes=32 * 1024 * 1024,
        ),
        cost_estimate=pl.CostEstimate(
            flops=2 * PART * B * (C * nb + nb * ncls_pad),
            transcendentals=0,
            bytes_accessed=bytes_accessed,
        ),
    )(pooled, w1_f, b1_f, w2_p, b2_p)

    out = out[:, :, :ncls]
    return [out[i] for i in range(PART)]


def init_params(key, feat_dim, num_bottleneck, class_num):
    """Deterministic stand-in for weights_init_kaiming / weights_init_classifier."""
    k1, k2, k3 = jax.random.split(key, 3)
    # Linear(feat_dim, nb): kaiming_normal, mode='fan_out' -> std = sqrt(2/nb); bias 0
    w1 = jax.random.normal(k1, (PART, feat_dim, num_bottleneck), jnp.float32) \
        * jnp.sqrt(2.0 / num_bottleneck)
    b1 = jnp.zeros((PART, num_bottleneck), jnp.float32)
    # BatchNorm1d: weight ~ N(1.0, 0.02), bias 0, running stats mean=0 / var=1
    gamma = 1.0 + 0.02 * jax.random.normal(k2, (PART, num_bottleneck), jnp.float32)
    beta = jnp.zeros((PART, num_bottleneck), jnp.float32)
    rmean = jnp.zeros((PART, num_bottleneck), jnp.float32)
    rvar = jnp.ones((PART, num_bottleneck), jnp.float32)
    # classifier Linear(nb, class_num): weight ~ N(0, 0.001), bias 0
    w2 = 0.001 * jax.random.normal(k3, (PART, num_bottleneck, class_num), jnp.float32)
    b2 = jnp.zeros((PART, class_num), jnp.float32)
    return w1, b1, gamma, beta, rmean, rvar, w2, b2


def pcb_forward_ref(x_nchw, params):
    """Pure-JAX f32 reference of the same eval-mode forward pass."""
    w1, b1, gamma, beta, rmean, rvar, w2, b2 = params
    B, C, H, W = x_nchw.shape
    hs = H // PART
    pooled = x_nchw.reshape(B, C, PART, hs, W).mean(axis=(3, 4))  # (B, C, PART)
    outs = []
    for i in range(PART):
        f = pooled[:, :, i]                                        # (B, C)
        h = f @ w1[i] + b1[i]
        h = (h - rmean[i]) * (gamma[i] / jnp.sqrt(rvar[i] + BN_EPS)) + beta[i]
        h = jnp.where(h > 0, h, LEAKY_SLOPE * h)
        outs.append(h @ w2[i] + b2[i])
    return outs


if __name__ == "__main__":
    # Small shapes consistent with the module structure (real PCB: C=2048,
    # num_bottleneck=512, class_num=751, feature map ~ (B, 2048, 24, 8)).
    B, C, H, W = 2, 256, 12, 4
    NUM_BOTTLENECK, CLASS_NUM = 128, 8

    key = jax.random.PRNGKey(0)
    kx, kp = jax.random.split(key)
    x = jax.random.normal(kx, (B, C, H, W), jnp.float32)   # backbone feature map (NCHW)
    params = init_params(kp, C, NUM_BOTTLENECK, CLASS_NUM)

    # One-time weight prep (BN fold + bf16 cast + class-dim pad), then forward.
    prep = jax.block_until_ready(prepare_params(params))
    ys = jax.block_until_ready(pcb_forward(x, prep))
    refs = pcb_forward_ref(x, params)

    assert len(ys) == PART
    for y, r in zip(ys, refs):
        assert y.shape == (B, CLASS_NUM), y.shape
        assert jnp.allclose(y, r, rtol=2e-2, atol=2e-2), float(jnp.max(jnp.abs(y - r)))

    print("KERNEL_OK")
</pallas_src>

<mosaic_0001>
module attributes {stable_mosaic.version = 11 : i64} {
  func.func @_pcb_head_kernel(%arg0: i32, %arg1: memref<1x2x256xbf16, #tpu.memory_space<vmem>>, %arg2: memref<1x256x128xbf16, #tpu.memory_space<vmem>>, %arg3: memref<1x1x128xf32, #tpu.memory_space<vmem>>, %arg4: memref<1x128x128xbf16, #tpu.memory_space<vmem>>, %arg5: memref<1x1x128xf32, #tpu.memory_space<vmem>>, %arg6: memref<1x2x128xf32, #tpu.memory_space<vmem>>) attributes {dimension_semantics = [#tpu.dimension_semantics<parallel>], iteration_bounds = array<i64: 6>, scalar_prefetch = 0 : i64, scratch_operands = 0 : i64, tpu.core_type = #tpu.core_type<tc>, window_params = [{transform_indices = @transform_0, window_bounds = array<i64: 1, 2, 256>}, {transform_indices = @transform_1, window_bounds = array<i64: 1, 256, 128>}, {transform_indices = @transform_2, window_bounds = array<i64: 1, 1, 128>}, {transform_indices = @transform_3, window_bounds = array<i64: 1, 128, 128>}, {transform_indices = @transform_4, window_bounds = array<i64: 1, 1, 128>}, {transform_indices = @transform_5, window_bounds = array<i64: 1, 2, 128>}]} {
    %c0 = arith.constant 0 : index
    %c0_0 = arith.constant 0 : index
    %c0_1 = arith.constant 0 : index
    %0 = vector.load %arg1[%c0, %c0_0, %c0_1] : memref<1x2x256xbf16, #tpu.memory_space<vmem>>, vector<1x2x256xbf16>
    %1 = vector.shape_cast %0 : vector<1x2x256xbf16> to vector<2x256xbf16>
    %c0_2 = arith.constant 0 : index
    %c0_3 = arith.constant 0 : index
    %c0_4 = arith.constant 0 : index
    %2 = vector.load %arg2[%c0_2, %c0_3, %c0_4] : memref<1x256x128xbf16, #tpu.memory_space<vmem>>, vector<1x256x128xbf16>
    %3 = vector.shape_cast %2 : vector<1x256x128xbf16> to vector<256x128xbf16>
    %cst = arith.constant dense<0.000000e+00> : vector<2x128xf32>
    %4 = tpu.matmul %1, %3, %cst {dimension_numbers = #tpu.dot_dimension_numbers<[1], [0], [0], [1], [0, 0, 1, 1], [], []>} : vector<2x256xbf16>, vector<256x128xbf16>, vector<2x128xf32> -> vector<2x128xf32>
    %c0_5 = arith.constant 0 : index
    %c0_6 = arith.constant 0 : index
    %c0_7 = arith.constant 0 : index
    %5 = vector.load %arg3[%c0_5, %c0_6, %c0_7] : memref<1x1x128xf32, #tpu.memory_space<vmem>>, vector<1x1x128xf32>
    %6 = vector.shape_cast %5 : vector<1x1x128xf32> to vector<1x128xf32>
    %7 = vector.broadcast %6 : vector<1x128xf32> to vector<2x128xf32>
    %8 = arith.addf %4, %7 : vector<2x128xf32>
    %cst_8 = arith.constant 0.000000e+00 : f32
    %9 = vector.broadcast %cst_8 : f32 to vector<2x128xf32>
    %10 = arith.cmpf ogt, %8, %9 : vector<2x128xf32>
    %cst_9 = arith.constant 1.000000e-01 : f32
    %11 = vector.broadcast %cst_9 : f32 to vector<2x128xf32>
    %12 = arith.mulf %11, %8 : vector<2x128xf32>
    %13 = arith.select %10, %8, %12 : vector<2x128xi1>, vector<2x128xf32>
    %14 = arith.truncf %13 : vector<2x128xf32> to vector<2x128xbf16>
    %c0_10 = arith.constant 0 : index
    %c0_11 = arith.constant 0 : index
    %c0_12 = arith.constant 0 : index
    %15 = vector.load %arg4[%c0_10, %c0_11, %c0_12] : memref<1x128x128xbf16, #tpu.memory_space<vmem>>, vector<1x128x128xbf16>
    %16 = vector.shape_cast %15 : vector<1x128x128xbf16> to vector<128x128xbf16>
    %cst_13 = arith.constant dense<0.000000e+00> : vector<2x128xf32>
    %17 = tpu.matmul %14, %16, %cst_13 {dimension_numbers = #tpu.dot_dimension_numbers<[1], [0], [0], [1], [0, 0, 1, 1], [], []>} : vector<2x128xbf16>, vector<128x128xbf16>, vector<2x128xf32> -> vector<2x128xf32>
    %c0_14 = arith.constant 0 : index
    %c0_15 = arith.constant 0 : index
    %c0_16 = arith.constant 0 : index
    %18 = vector.load %arg5[%c0_14, %c0_15, %c0_16] : memref<1x1x128xf32, #tpu.memory_space<vmem>>, vector<1x1x128xf32>
    %19 = vector.shape_cast %18 : vector<1x1x128xf32> to vector<1x128xf32>
    %20 = vector.broadcast %19 : vector<1x128xf32> to vector<2x128xf32>
    %21 = arith.addf %17, %20 : vector<2x128xf32>
    %c0_17 = arith.constant 0 : index
    %c0_18 = arith.constant 0 : index
    %c0_19 = arith.constant 0 : index
    %22 = vector.load %arg6[%c0_17, %c0_18, %c0_19] : memref<1x2x128xf32, #tpu.memory_space<vmem>>, vector<1x2x128xf32>
    %23 = vector.shape_cast %22 : vector<1x2x128xf32> to vector<2x128xf32>
    %24 = vector.shape_cast %21 : vector<2x128xf32> to vector<1x2x128xf32>
    tpu.vector_store %arg6[%c0_17, %c0_18, %c0_19], %24 {strides = array<i32>} : memref<1x2x128xf32, #tpu.memory_space<vmem>>, vector<1x2x128xf32>,
    return
  }
  func.func @transform_0(%arg0: i32) -> (i32, i32, i32) {
    %c0_i32 = arith.constant 0 : i32
    %c0_i32_0 = arith.constant 0 : i32
    %c0_i32_1 = arith.constant 0 : i32
    return %arg0, %c0_i32, %c0_i32_0 : i32, i32, i32
  }
  func.func @transform_1(%arg0: i32) -> (i32, i32, i32) {
    %c0_i32 = arith.constant 0 : i32
    %c0_i32_0 = arith.constant 0 : i32
    %c0_i32_1 = arith.constant 0 : i32
    return %arg0, %c0_i32, %c0_i32_0 : i32, i32, i32
  }
  func.func @transform_2(%arg0: i32) -> (i32, i32, i32) {
    %c0_i32 = arith.constant 0 : i32
    %c0_i32_0 = arith.constant 0 : i32
    %c0_i32_1 = arith.constant 0 : i32
    return %arg0, %c0_i32, %c0_i32_0 : i32, i32, i32
  }
  func.func @transform_3(%arg0: i32) -> (i32, i32, i32) {
    %c0_i32 = arith.constant 0 : i32
    %c0_i32_0 = arith.constant 0 : i32
    %c0_i32_1 = arith.constant 0 : i32
    return %arg0, %c0_i32, %c0_i32_0 : i32, i32, i32
  }
  func.func @transform_4(%arg0: i32) -> (i32, i32, i32) {
    %c0_i32 = arith.constant 0 : i32
    %c0_i32_0 = arith.constant 0 : i32
    %c0_i32_1 = arith.constant 0 : i32
    return %arg0, %c0_i32, %c0_i32_0 : i32, i32, i32
  }
  func.func @transform_5(%arg0: i32) -> (i32, i32, i32) {
    %c0_i32 = arith.constant 0 : i32
    %c0_i32_0 = arith.constant 0 : i32
    %c0_i32_1 = arith.constant 0 : i32
    return %arg0, %c0_i32, %c0_i32_0 : i32, i32, i32
  }
}

</mosaic_0001>

<bundles_post_ra>
// kernel: tpu_custom_call.1
= control target key start
LH: loop header
LB: loop body
LE: loop exit
PB: predicated region body
PF: predicated region fallthrough
CT: control target
= control target key end

     0   :  { %s1534_s0 = inlined_call_operand.hbm [shape: bf16[6,2,256], index: 0, kind: input, shape index: {}]   ;;  %s1535_s1 = inlined_call_operand.hbm [shape: bf16[6,256,128], index: 1, kind: input, shape index: {}]   ;;  %s1536_s2 = inlined_call_operand.hbm [shape: f32[6,1,128], index: 2, kind: input, shape index: {}]   ;;  %s1537_s3 = inlined_call_operand.hbm [shape: bf16[6,128,128], index: 3, kind: input, shape index: {}]   ;;  %s1538_s4 = inlined_call_operand.hbm [shape: f32[6,1,128], index: 4, kind: input, shape index: {}]   ;;  %s1539_s5 = inlined_call_operand.hbm [shape: f32[6,2,128], index: 5, kind: output, shape index: {}]  }
   0x1   :  { %1547 = sst [smem:[#allocation20_spill]] %s1535_s1 }
   0x2   :  { %1548 = sst [smem:[#allocation21_spill]] %s1537_s3 }
   0x3   :  { %10 = vsyncpa [#allocation3], 0 }
   0x4   :  { %12 = vsyncpa [#allocation3 + $0x1], 0 }
   0x5   :  { %13 = vsyncpa [#allocation6], 0 }
   0x6   :  { %15 = vsyncpa [#allocation6 + $0x1], 0 }
   0x7   :  { %16 = vsyncpa [#allocation9], 0 }
   0x8   :  { %18 = vsyncpa [#allocation9 + $0x1], 0 }
   0x9   :  { %19 = vsyncpa [#allocation4], 0 }
   0xa   :  { %21 = vsyncpa [#allocation4 + $0x1], 0  ;;  %s1275_s18 = smov 0   ;;  %s1277_s19 = smov 0  }
   0xb   :  { %s1279_s20 = smov 0   ;;  %s1281_s21 = smov 0  }
   0xc LB: > { %1549 = sst [smem:[#allocation16_spill]] %s1237_s20  ;;  %s1296_s22 = sadd.s32 4294967295, %s1241_s21   ;;  %s1241_s21 = sphi %s1281_s21, %s1565_s21   ;;  %s1237_s20 = sphi %s1279_s20, %s1567_s20   ;;  %s1233_s19 = sphi %s1277_s19, %s1569_s19   ;;  %s1229_s18 = sphi %s1275_s18, %s1568_s18  }
   0xd   : > { %s805_s23 = sadd.s32 4294967294, %s1241_s21   ;;  %s1300_s24 = sadd.s32 1, %s1241_s21  }
   0xe   : > { %1550 = sst [smem:[#allocation17_spill]] %s1300_s24  ;;  %s34_s25 = sadd.s32 1, %s1237_s20 }
   0xf   : > { %s31_s26 = ssub.s32 %s1241_s21, %s1300_s24  ;;  %p41_p0 = scmp.ne.s32.totalorder %s1237_s20, %s1233_s19 }
  0x10   : > { %p32_p1 = scmp.eq.s32.totalorder %s31_s26, 0  ;;  %p42_p2 = scmp.eq.s32.totalorder %s1241_s21, 0 }
  0x11   : > { %p47_p3 = scmp.ne.s32.totalorder %s1233_s19, %s1229_s18  ;;  %p48_p4 = scmp.eq.s32.totalorder %s1296_s22, 0 }
  0x12   : > { %s1312_s27 = scalar_select %p32_p1, %s1237_s20, %s34_s25  }
  0x13   : > { %p43_p5 = por %p42_p2, %p41_p0  ;;  %p1314_p6 = por %p48_p4, %p47_p3 }
  0x14   : > { %1551 = sst [smem:[#allocation18_spill]] %s1312_s27  ;;  %p175_p7 = scmp.eq.s32.totalorder %s1296_s22, 5 }
  0x15   : > { %p181_p8 = scmp.eq.s32.totalorder %s805_s23, 5  ;;  %p979_p9 = scmp.lt.s32.totalorder %s1241_s21, 6 }
  0x16   : > { %p1320_p10 = por %p175_p7, %p41_p0  ;;  %s1329_s6 = sand.u32 1, %s1237_s20  }
  0x17   : > { %p1324_p11 = por %p181_p8, %p47_p3  ;;  %p1331_p12 = pnand %p979_p9, %p43_p5 }
  0x18   : > { %s1540_s8 = sand.u32 1, %s1241_s21   ;;  %s810_s9 = sshll.u32 %s1329_s6, 7 }
  0x19   : > { %s1554_s30 = scalar_select %p1324_p11, 1, 0 }
  0x1a   : > { %s921_s10 = sshll.u32 %s1241_s21, 7  ;;  %s1557_s1 = sld [smem:[#allocation20_spill]] }
  0x1b   : > { %1555 = sst [smem:[#allocation19_spill]] %s1554_s30  ;;  %s224_s14 = scalar_lea.vmem [#allocation5], %s810_s9 }
  0x1c   : > { %s232_s15 = sshll.u32 %s224_s14, 4  ;;  %p816_p13 = scmp.ge.s32.totalorder %s1241_s21, 1  ;;  %s233_s15 = int_to_ptr.vmem [resolvable:$true] %s232_s15 }
  0x1d   : > { %s1344_s17 = scalar_lea.sflag [#allocation6], %s1540_s8  ;;  %p1348_p1 = pneg %p1331_p12 }
  0x20   : > { %s229_s13 = scalar_lea.hbm %s1557_s1, %s921_s10  ;;  %s1024_s11 = scalar_lea.hbm %s1557_s1, 768 }
  0x21   : > { %s230_s16 = sshll.u32 %s229_s13, 4  ;;  %s231_s16 = int_to_ptr.hbm [resolvable:$true] %s230_s16 }
  0x22   : > { %s1017_s23 = sshra.s32 %s231_s16, 4  ;;  %s1018_s23 = int_to_ptr.hbm [resolvable:$true] %s1017_s23 }
  0x23   : > { %s1019_s25 = scalar_lea.hbm %s1018_s23, 128  ;;  %p1025_p4 = scmp.lt.s32.totalorder %s1018_s23, %s1557_s1 }
  0x24   : > { %p1020_p0 = scmp.ne.s32.totalorder %s1018_s23, %s1019_s25  ;;  %p1026_p5 = scmp.lt.s32.totalorder %s1024_s11, %s1019_s25 }
  0x26   : > { %p1022_p2 = pnand %p1348_p1, %p1020_p0  ;;  %p1027_p7 = por %p1026_p5, %p1025_p4 }
  0x28   : > { %p1023_p3 = pneg %p1022_p2 }
  0x2a   : > { %p1028_p8 = pnand %p1027_p7, %p1023_p3 }
  0x2c   : > { %1031 = shalt.err (!%p1028_p8)
}
  0x2d   : > { %s1542_s14 = smov 64   ;;  %s1543_s8 = smov 4  }
  0x2e   : > { %965 = dma.hbm_to_vmem [thread:$0]  (!%p1331_p12), %s231_s16, 2048, %s233_s15, %s1344_s17, %s1542_s14, %s1542_s14, %s1543_s8  }
  0x2f   : > { %p296_p9 = scmp.lt.s32.totalorder %s1241_s21, 7  ;;  %s813_s23 = sshll.u32 %s1329_s6, 6 }
  0x30   : > { %s922_s25 = sshll.u32 %s1241_s21, 6  ;;  %s1560_s3 = sld [smem:[#allocation21_spill]] }
  0x31   : > { %p1371_p0 = pnand %p816_p13, %p296_p9  ;;  %s263_s13 = scalar_lea.vmem [#allocation8], %s813_s23 }
  0x32   : > { %s271_s1 = sshll.u32 %s263_s13, 4  ;;  %s1561_s20 = sand.u32 1, %s1241_s21   ;;  %s272_s1 = int_to_ptr.vmem [resolvable:$true] %s271_s1 }
  0x33   : > { %s1380_s15 = scalar_lea.sflag [#allocation9], %s1561_s20 }
  0x36   : > { %s268_s12 = scalar_lea.hbm %s1560_s3, %s922_s25  ;;  %s1054_s10 = scalar_lea.hbm %s1560_s3, 384 }
  0x37   : > { %s269_s27 = sshll.u32 %s268_s12, 4  ;;  %s270_s27 = int_to_ptr.hbm [resolvable:$true] %s269_s27 }
  0x38   : > { %s1047_s16 = sshra.s32 %s270_s27, 4  ;;  %s1048_s16 = int_to_ptr.hbm [resolvable:$true] %s1047_s16 }
  0x39   : > { %s1049_s14 = scalar_lea.hbm %s1048_s16, 64  ;;  %p1055_p4 = scmp.lt.s32.totalorder %s1048_s16, %s1560_s3 }
  0x3a   : > { %p1050_p2 = scmp.ne.s32.totalorder %s1048_s16, %s1049_s14  ;;  %p1056_p5 = scmp.lt.s32.totalorder %s1054_s10, %s1049_s14 }
  0x3c   : > { %p1052_p13 = pnand %p1050_p2, %p1348_p1  ;;  %p1057_p7 = por %p1056_p5, %p1055_p4 }
  0x3e   : > { %p1053_p3 = pneg %p1052_p13 }
  0x40   : > { %p1058_p8 = pnand %p1057_p7, %p1053_p3 }
  0x42   : > { %1061 = shalt.err (!%p1058_p8)
}
  0x43   : > { %s1562_s20 = smov 4   ;;  %s1563_s11 = smov 64  }
  0x44   : > { %971 = dma.hbm_to_vmem [thread:$0]  (!%p1331_p12), %s270_s27, 1024, %s272_s1, %s1380_s15, %s1563_s11, %s1563_s11, %s1562_s20  }
  0x45   : > { %s808_s24 = sshll.u32 %s1329_s6, 1  ;;  %s809_s8 = sshll.u32 %s1241_s21, 1 }
  0x46   : > { %s209_s14 = scalar_lea.hbm %s1534_s0, %s809_s8  ;;  %s205_s10 = scalar_lea.vmem [#allocation2], %s808_s24 }
  0x47   : > { %s211_s16 = sshll.u32 %s209_s14, 4  ;;  %s213_s25 = sshll.u32 %s205_s10, 4  ;;  %s212_s16 = int_to_ptr.hbm [resolvable:$true] %s211_s16  ;;  %s214_s25 = int_to_ptr.vmem [resolvable:$true] %s213_s25 }
  0x48   : > { %s202_s23 = scalar_lea.sflag [#allocation3], %s1329_s6  ;;  %s1077_s3 = sshra.s32 %s212_s16, 4  ;;  %s1078_s3 = int_to_ptr.hbm [resolvable:$true] %s1077_s3 }
  0x49   : > { %s1079_s30 = scalar_lea.hbm %s1078_s3, 2  ;;  %s1084_s20 = scalar_lea.hbm %s1534_s0, 12 }
  0x4a   : > { %p1080_p9 = scmp.ne.s32.totalorder %s1078_s3, %s1079_s30  ;;  %p1085_p3 = scmp.lt.s32.totalorder %s1078_s3, %s1534_s0 }
  0x4b   : > { %p1086_p4 = scmp.lt.s32.totalorder %s1084_s20, %s1079_s30 }
  0x4c   : > { %p1082_p2 = pnand %p1080_p9, %p1348_p1 }
  0x4d   : > { %p1087_p5 = por %p1086_p4, %p1085_p3 }
  0x4e   : > { %p1083_p13 = pneg %p1082_p2 }
  0x50   : > { %p1088_p7 = pnand %p1087_p5, %p1083_p13 }
  0x52   : > { %1091 = shalt.err (!%p1088_p7)
}
  0x53   : > { %962 = dma.hbm_to_vmem [thread:$0]  (!%p1331_p12), %s212_s16, 32, %s214_s25, %s202_s23  }
  0x54   : > { %s248_s13 = scalar_lea.hbm %s1536_s2, %s1241_s21  ;;  %s245_s10 = scalar_lea.vmem [#allocation7], %s1329_s6 }
  0x55   : > { %s250_s14 = sshll.u32 %s248_s13, 4  ;;  %s252_s1 = sshll.u32 %s245_s10, 4  ;;  %s251_s14 = int_to_ptr.hbm [resolvable:$true] %s250_s14  ;;  %s253_s1 = int_to_ptr.vmem [resolvable:$true] %s252_s1 }
  0x56   : > { %s1107_s3 = sshra.s32 %s251_s14, 4  ;;  %s1114_s16 = scalar_lea.hbm %s1536_s2, 6  ;;  %s1108_s3 = int_to_ptr.hbm [resolvable:$true] %s1107_s3 }
  0x57   : > { %s1109_s30 = scalar_lea.hbm %s1108_s3, 1  ;;  %p1115_p13 = scmp.lt.s32.totalorder %s1108_s3, %s1536_s2 }
  0x58   : > { %p1110_p8 = scmp.ne.s32.totalorder %s1108_s3, %s1109_s30  ;;  %p1116_p3 = scmp.lt.s32.totalorder %s1114_s16, %s1109_s30 }
  0x5a   : > { %p1112_p9 = pnand %p1110_p8, %p1348_p1  ;;  %p1117_p4 = por %p1116_p3, %p1115_p13 }
  0x5c   : > { %p1113_p2 = pneg %p1112_p9 }
  0x5e   : > { %p1118_p5 = pnand %p1117_p4, %p1113_p2 }
  0x60   : > { %1121 = shalt.err (!%p1118_p5)
}
  0x61   : > { %968 = dma.hbm_to_vmem [thread:$0]  (!%p1331_p12), %s251_s14, 16, %s253_s1, %s1344_s17  }
  0x62   : > { %s287_s24 = scalar_lea.hbm %s1538_s4, %s1241_s21  ;;  %s284_s13 = scalar_lea.vmem [#allocation10], %s1329_s6 }
  0x63   : > { %s289_s8 = sshll.u32 %s287_s24, 4  ;;  %s291_s10 = sshll.u32 %s284_s13, 4  ;;  %s290_s8 = int_to_ptr.hbm [resolvable:$true] %s289_s8  ;;  %s292_s10 = int_to_ptr.vmem [resolvable:$true] %s291_s10 }
  0x64   : > { %s1137_s3 = sshra.s32 %s290_s8, 4  ;;  %s1144_s17 = scalar_lea.hbm %s1538_s4, 6  ;;  %s1138_s3 = int_to_ptr.hbm [resolvable:$true] %s1137_s3 }
  0x65   : > { %s1139_s30 = scalar_lea.hbm %s1138_s3, 1  ;;  %p1145_p2 = scmp.lt.s32.totalorder %s1138_s3, %s1538_s4 }
  0x66   : > { %p1140_p7 = scmp.ne.s32.totalorder %s1138_s3, %s1139_s30  ;;  %p1146_p13 = scmp.lt.s32.totalorder %s1144_s17, %s1139_s30 }
  0x68   : > { %p1142_p8 = pnand %p1140_p7, %p1348_p1  ;;  %p1147_p3 = por %p1146_p13, %p1145_p2 }
  0x6a   : > { %p1143_p9 = pneg %p1142_p8 }
  0x6c   : > { %p1148_p4 = pnand %p1147_p3, %p1143_p9 }
  0x6e   : > { %1151 = shalt.err (!%p1148_p4)
}
  0x6f   : > { %974 = dma.hbm_to_vmem [thread:$0]  (!%p1331_p12), %s290_s8, 16, %s292_s10, %s1380_s15  }
  0x70   : > { %300 = sbr.rel (%p1371_p0) target bundleno = 431 (0x1af), region = 40  ;;  %s1447_s6 = sand.u32 (!%p1371_p0), 1, %s1233_s19  }
  0x71   : > { %s817_s26 = sshll.u32 (!%p1371_p0), %s1447_s6, 1  ;;  %s303_s16 = scalar_lea.sflag (!%p1371_p0), [#allocation3], %s1447_s6 }
  0x72   : > { %s306_s25 = scalar_lea.vmem (!%p1371_p0), [#allocation2], %s817_s26 }
  0x75   : > { %1212 = dma.done.wait (%p1314_p6), %s303_s16, 32  }
  0x76   : > { %1214 = vsyncadd (%p1314_p6), %s303_s16, 4294967264  ;;  %s312_s7 = sand.u32 1, %s1296_s22   ;;  %s818_s9 = sshll.u32 %s1447_s6, 7 }
  0x77   : > { %s313_s15 = scalar_lea.sflag [#allocation6], %s312_s7  ;;  %s1459_s23 = scalar_lea.vmem [#allocation5], %s818_s9 }
  0x78   : > { %1216 = dma.done.wait (%p1314_p6), %s313_s15, 2064  }
  0x79   : > { %1218 = vsyncadd (%p1314_p6), %s313_s15, 4294965232  ;;  %s819_s11 = sshll.u32 %s1447_s6, 6  ;;  %s325_s12 = scalar_lea.vmem [#allocation7], %s1447_s6 }
  0x7a   : > { %s332_s24 = scalar_lea.sflag [#allocation9], %s312_s7  ;;  %s1467_s8 = scalar_lea.vmem [#allocation8], %s819_s11 }
  0x7b   : > { %1220 = dma.done.wait (%p1314_p6), %s332_s24, 1040  }
  0x7c   : > { %1222 = vsyncadd (%p1314_p6), %s332_s24, 4294966256  ;;  %v930_v0 = vld [vmem:[%s1459_s23 + $0x38] sm:$0xff]  ;;  %v929_v2 = vld [vmem:[%s1459_s23 + $0x30] sm:$0xff]  ;;  %s344_s28 = scalar_lea.vmem [#allocation10], %s1447_s6  ;;  %s918_s13 = sshll.u32 %s1296_s22, 1 }
  0x7d   : > { %v938_v1 = vld [vmem:[%s1459_s23 + $0x78] sm:$0xff]  ;;  %529 = vmatpush.bf16.msra.mxu0 %v930_v0  ;;  %v937_v3 = vld [vmem:[%s1459_s23 + $0x70] sm:$0xff]  ;;  %v928_v6 = vld [vmem:[%s1459_s23 + $0x28] sm:$0xff]  ;;  %s652_s30 = scalar_lea.hbm %s1539_s5, %s918_s13  ;;  %s389_s27 = scalar_lea.vmem [#allocation11], %s817_s26 }
  0x7e   : > { %542 = vmatpush.bf16.msra.mxu1 %v938_v1  ;;  %v390_v4 = vld [vmem:[%s306_s25] sm:$0x3]  ;;  %v936_v7 = vld [vmem:[%s1459_s23 + $0x68] sm:$0xff]  ;;  %v945_v8 = vld [vmem:[%s1467_s8 + $0x30] sm:$0xff]  ;;  %s654_s20 = sshll.u32 %s389_s27, 4  ;;  %s656_s17 = sshll.u32 %s652_s30, 4  ;;  %s655_s20 = int_to_ptr.vmem [resolvable:$true] %s654_s20  ;;  %s657_s17 = int_to_ptr.hbm [resolvable:$true] %s656_s17 }
  0x7f   : > { %v946_v5 = vld [vmem:[%s1467_s8 + $0x38] sm:$0xff]  ;;  %428 = vst [vmem:[#allocation1] ss:$9 sm:$0xff] %v390_v4  ;;  %v944_v11 = vld [vmem:[%s1467_s8 + $0x28] sm:$0xff]  ;;  %v943_v14 = vld [vmem:[%s1467_s8 + $0x20] sm:$0xff]  ;;  %s642_s14 = scalar_lea.sflag [#allocation4], %s1447_s6 }
  0x80   : > { %627 = vmatpush.bf16.msra.mxu2 %v946_v5  ;;  %v927_v9 = vld [vmem:[%s1459_s23 + $0x20] sm:$0xff]  ;;  %v926_v12 = vld [vmem:[%s1459_s23 + $0x18] sm:$0xff]  ;;  %v925_v15 = vld [vmem:[%s1459_s23 + $0x10] sm:$0xff]  ;;  %s1181_s1 = sshra.s32 %s657_s17, 4  ;;  %s1187_s7 = scalar_lea.hbm %s1539_s5, 12  ;;  %s1182_s1 = int_to_ptr.hbm [resolvable:$true] %s1181_s1 }
  0x81   : > { %530 = vmatpush.bf16.msra.mxu0 %v929_v2  ;;  %v935_v10 = vld [vmem:[%s1459_s23 + $0x60] sm:$0xff]  ;;  %v934_v13 = vld [vmem:[%s1459_s23 + $0x58] sm:$0xff]  ;;  %v933_v16 = vld [vmem:[%s1459_s23 + $0x50] sm:$0xff]  ;;  %s1183_s16 = scalar_lea.hbm %s1182_s1, 2  ;;  %p1188_p0 = scmp.lt.s32.totalorder %s1182_s1, %s1539_s5 }
  0x82   : > { %543 = vmatpush.bf16.msra.mxu1 %v937_v3  ;;  %v942_v17 = vld [vmem:[%s1467_s8 + $0x18] sm:$0xff]  ;;  %v924_v18 = vld [vmem:[%s1459_s23 + $0x8] sm:$0xff]  ;;  %v941_v20 = vld [vmem:[%s1467_s8 + $0x10] sm:$0xff]  ;;  %p1184_p6 = scmp.ne.s32.totalorder %s1182_s1, %s1183_s16  ;;  %p1189_p5 = scmp.lt.s32.totalorder %s1187_s7, %s1183_s16 }
  0x83   : > { %v932_v19 = vld [vmem:[%s1459_s23 + $0x48] sm:$0xff]  ;;  %v923_v21 = vld [vmem:[%s1459_s23] sm:$0xff]  ;;  %v1015_v27 = vld [vmem:[%s325_s12] ss:$0 sm:$0xff] }
  0x84   : > { %628 = vmatpush.bf16.msra.mxu2 %v945_v8  ;;  %v931_v22 = vld [vmem:[%s1459_s23 + $0x40] sm:$0xff]  ;;  %v940_v25 = vld [vmem:[%s1467_s8 + $0x8] sm:$0xff]  ;;  %v1016_v37 = vld [vmem:[%s344_s28] ss:$0 sm:$0xff]  ;;  %p1185_p12 = pnand %p1184_p6, %p1320_p10  ;;  %p1190_p7 = por %p1189_p5, %p1188_p0 }
  0x85   : > { %531 = vmatpush.bf16.msra.mxu0 %v928_v6  ;;  %v939_v26 = vld [vmem:[%s1467_s8] sm:$0xff] }
  0x86   : > { %544 = vmatpush.bf16.msra.mxu1 %v936_v7  ;;  %v429_v23 = vld [vmem:[#allocation1] sm:$0xff]  ;;  %v430_v24 = vld [vmem:[#allocation1 + $0x9] sm:$0xff]  ;;  %p1186_p1 = pneg %p1185_p12 }
  0x88   : > { %629 = vmatpush.bf16.msra.mxu2 %v944_v11  ;;  %p1191_p8 = pnand %p1190_p7, %p1186_p1 }
  0x89   : > { %532 = vmatpush.bf16.msra.mxu0 %v927_v9 }
  0x8a   : > { %545 = vmatpush.bf16.msra.mxu1 %v935_v10 }
  0x8c   : > { %630 = vmatpush.bf16.msra.mxu2 %v943_v14 }
  0x8d   : > { %533 = vmatpush.bf16.msra.mxu0 %v926_v12 }
  0x8e   : > { %546 = vmatpush.bf16.msra.mxu1 %v934_v13 }
  0x90   : > { %631 = vmatpush.bf16.msra.mxu2 %v942_v17 }
  0x91   : > { %534 = vmatpush.bf16.msra.mxu0 %v925_v15 }
  0x92   : > { %547 = vmatpush.bf16.msra.mxu1 %v933_v16 }
  0x94   : > { %632 = vmatpush.bf16.msra.mxu2 %v941_v20 }
  0x95   : > { %535 = vmatpush.bf16.msra.mxu0 %v924_v18 }
  0x96   : > { %548 = vmatpush.bf16.msra.mxu1 %v932_v19 }
  0x98   : > { %633 = vmatpush.bf16.msra.mxu2 %v940_v25 }
  0x99   : > { %536 = vmatpush.bf16.msra.mxu0 %v923_v21 }
  0x9a   : > { %549 = vmatpush.bf16.msra.mxu1 %v931_v22 }
  0x9c   : > { %537 = vmatmul.bf16.vlgmr.msra.gmra.mxu0 %v429_v23  ;;  %634 = vmatpush.bf16.msra.mxu2 %v939_v26 }
  0x9d   : > { %550 = vmatmul.bf16.vlgmr.msra.gmra.mxu1 %v430_v24 }
 0x119   : > { %v538_v28 = vpop.f32.mrf.mxu0 }
 0x11a   : > { %v551_v29 = vpop.f32.mrf.mxu1  ;;  %v539_v30 = vadd.f32 %v1015_v27, %v538_v28 }
 0x11c   : > { %v552_v31 = vadd.f32 %v551_v29, %v539_v30 }
 0x11e   : > { %v556_v32 = vmul.f32 0.1, %v552_v31  ;;  %vm555_vm0 = vcmp.gt.f32.partialorder %v552_v31, 0.0 }
 0x120   : > { %v557_v33 = vsel %vm555_vm0, %v552_v31, %v556_v32 }
 0x121   : > { %v540_v34 = vpop.f32.mrf.mxu0  ;;  %v558_v36 = vpack.c.bf16 %v557_v33, %v557_v33 }
 0x122   : > { %v553_v35 = vpop.f32.mrf.mxu1 }
 0x123   : > { %635 = vmatmul.bf16.vlgmr.msra.gmra.mxu2 %v558_v36 }
 0x1a6   : > { %v636_v38 = vpop.f32.mrf.mxu2 }
 0x1a7   : > { %v637_v39 = vadd.f32 %v1016_v37, %v636_v38 }
 0x1a9   : > { %640 = vst [vmem:[%s389_s27] sm:$0x3] %v637_v39 }
 0x1aa   : > { %1194 = shalt.err (!%p1191_p8)
}
 0x1ab   : > { %957 = dma.vmem_to_hbm [thread:$0]  (%p1320_p10), %s655_s20, 32, %s657_s17, %s642_s14  }
 0x1ae   : > { %v638_v40 = vpop.f32.mrf.mxu2 }
 0x1af PF: > { %p980_p9 = scmp.ge.s32.totalorder %s1241_s21, 2  ;;  %s668_s15 = sand.u32 1, %s1229_s18  }
 0x1b0   : > { %s669_s23 = scalar_lea.sflag [#allocation4], %s668_s15 }
 0x1b1   : > { %p976_p2 = pnand %p980_p9, %p1324_p11 }
 0x1b3   : > { %p977_p13 = pneg %p976_p2 }
 0x1b5   : > { %1224 = dma.done.wait (%p977_p13), %s669_s23, 32  }
 0x1b6   : > { %1226 = vsyncadd (%p977_p13), %s669_s23, 4294967264  ;;  %s1565_s21 = sld [smem:[#allocation17_spill]]  ;;  %s1568_s18 = smov %s1233_s19 }
 0x1b7   : > { %s1566_s11 = sld [smem:[#allocation16_spill]] }
 0x1b8   : > { %s1567_s20 = sld [smem:[#allocation18_spill]] }
 0x1bc   : > { %p24_p3 = scmp.ge.s32.totalorder %s1565_s21, 8  }
 0x1bd   : > { %s1569_s19 = smov %s1566_s11 }
 0x1be   :  { %26 = sbr.rel (!%p24_p3) target bundleno = 12 (0xc), region = 133 }
 0x1c3   :  { %675 = vsyncpa [#allocation3], 1 }
 0x1c4   :  { %677 = vsyncpa [#allocation3 + $0x1], 1 }
 0x1c5   :  { %678 = vsyncpa [#allocation6], 1 }
 0x1c6   :  { %680 = vsyncpa [#allocation6 + $0x1], 1 }
 0x1c7   :  { %681 = vsyncpa [#allocation9], 1 }
 0x1c8   :  { %683 = vsyncpa [#allocation9 + $0x1], 1 }
 0x1c9   :  { %684 = vsyncpa [#allocation4], 1 }
 0x1ca   :  { %686 = vsyncpa [#allocation4 + $0x1], 1 }

</bundles_post_ra>
